<compile_context>
chip_gen: v7x
topology: tpu7x:2x2x1
jax: 0.10.0
libtpu: 0.0.40
codegen_flags: <defaults>
</compile_context>

<pallas_src>
import jax
import jax.numpy as jnp
from jax.experimental import pallas as pl
from jax.experimental.pallas import tpu as pltpu

H = W = 7
HW = H * W                     # 49
ROW_STRIDE = 9                 # padded-row stride of the flat padded buffer
HW_STRIDED = 63                # 7 output rows * row stride 9
PAD_FLAT = 90                  # (7+3) padded rows * 9-wide, flattened
C_IN = 128
C_OUT = 32
K_IM2COL = 9 * C_IN            # 1152
C313, C320, C327, C334, C348 = 512, 32, 32, 32, 32
C_TOTAL = C313 + C320 + C327 + C334 + C_OUT + C348   # 672


def _conv3x3_kernel(x_ref, w_ref, o_ref, xpad_ref):
    # x_ref:    (128, 49)  f32   input, channel-major, HW flattened
    # w_ref:    (32, 1152) bf16  weight, column index = (kh*3 + kw)*128 + c
    # o_ref:    (32, 49)   f32   conv output, channel-major, HW flattened
    # xpad_ref: (128, 90)  bf16  scratch: zero-padded input with row stride 9

    # ---- in-kernel zero-pad + bf16 cast ------------------------------------
    # Scratch persists across invocations -> must be re-zeroed every call so
    # the pad positions (which feed the border taps) are really zero.
    xpad_ref[...] = jnp.zeros_like(xpad_ref)
    xbf = x_ref[...].astype(jnp.bfloat16)              # single cast; math stays f32
    for r in range(H):                                  # input row r -> padded row r+1, col 1
        dst = ROW_STRIDE * (r + 1) + 1                  # = 9*r + 10 (static)
        xpad_ref[:, dst:dst + W] = xbf[:, W * r:W * (r + 1)]

    # ---- 9 accumulating (32,128) x (128,63) MXU dots (no im2col) -----------
    acc = None
    for t in range(9):
        kh, kw = divmod(t, 3)
        d = ROW_STRIDE * kh + kw                        # static lane offset 0..20
        part = jnp.dot(w_ref[:, C_IN * t:C_IN * (t + 1)],
                       xpad_ref[:, d:d + HW_STRIDED],
                       preferred_element_type=jnp.float32)
        acc = part if acc is None else acc + part       # chained f32 accumulation

    # ---- compact strided (32, 63) accumulator into the (32, 49) output -----
    for ph in range(H):
        o_ref[:, W * ph:W * (ph + 1)] = acc[:, ROW_STRIDE * ph:ROW_STRIDE * ph + W]


def prepare_conv_weight(weight_oihw):
    """One-time weight transform: OIHW (32,128,3,3) -> (32, 1152) bf16.

    Column layout matches the kernel's tap slicing: col = (kh*3 + kw)*128 + c.
    """
    w = jnp.transpose(weight_oihw, (0, 2, 3, 1))        # (32, 3, 3, 128)
    return w.reshape(C_OUT, K_IM2COL).astype(jnp.bfloat16)


_VMEM = pl.BlockSpec(memory_space=pltpu.MemorySpace.VMEM)

_COST = pl.CostEstimate(
    flops=2 * C_OUT * K_IM2COL * HW_STRIDED,                          # ~4.6 MFLOP
    transcendentals=0,
    bytes_accessed=C_IN * HW * 4 + C_OUT * K_IM2COL * 2 + C_OUT * HW * 4,
)


@jax.jit
def fused_conv_cat(x340, x313, x320, x327, x334, x348, w_mat):
    """Inputs in NCHW (batch 1); w_mat from prepare_conv_weight. Returns NCHW."""
    assert x340.shape == (1, C_IN, H, W), x340.shape    # batch-1 only (module spec)

    x49 = x340.reshape(C_IN, HW)                        # free bitcast, stays f32

    conv49 = pl.pallas_call(
        _conv3x3_kernel,
        out_shape=jax.ShapeDtypeStruct((C_OUT, HW), jnp.float32),
        in_specs=[_VMEM, _VMEM],
        out_specs=_VMEM,
        scratch_shapes=[pltpu.VMEM((C_IN, PAD_FLAT), jnp.bfloat16)],
        cost_estimate=_COST,
    )(x49, w_mat)

    conv = conv49.reshape(1, C_OUT, H, W)               # free bitcast

    # Channel concat in NCHW (XLA; passthroughs never enter the kernel).
    return jnp.concatenate([x313, x320, x327, x334, conv, x348], axis=1)


def _reference(x340, x313, x320, x327, x334, x348, weight_oihw):
    conv = jax.lax.conv_general_dilated(
        x340, weight_oihw, window_strides=(1, 1), padding=((1, 1), (1, 1)),
        dimension_numbers=("NCHW", "OIHW", "NCHW"),
        precision=jax.lax.Precision.HIGHEST)
    return jnp.concatenate([x313, x320, x327, x334, conv, x348], axis=1)


if __name__ == "__main__":
    key = jax.random.PRNGKey(0)
    ks = jax.random.split(key, 7)

    x313 = jax.random.normal(ks[0], (1, C313, H, W), jnp.float32)
    x320 = jax.random.normal(ks[1], (1, C320, H, W), jnp.float32)
    x327 = jax.random.normal(ks[2], (1, C327, H, W), jnp.float32)
    x334 = jax.random.normal(ks[3], (1, C334, H, W), jnp.float32)
    x340 = jax.random.normal(ks[4], (1, C_IN, H, W), jnp.float32)
    x348 = jax.random.normal(ks[5], (1, C348, H, W), jnp.float32)
    # deterministic Conv2d(128, 32, 3x3, bias=False) weight, kaiming-ish scale
    fan_in = C_IN * 3 * 3
    weight = jax.random.normal(ks[6], (C_OUT, C_IN, 3, 3), jnp.float32) * (fan_in ** -0.5)

    w_mat = prepare_conv_weight(weight)                 # once, outside the hot path

    out = fused_conv_cat(x340, x313, x320, x327, x334, x348, w_mat)
    out = jax.block_until_ready(out)

    assert out.shape == (1, C_TOTAL, H, W), out.shape
    ref = _reference(x340, x313, x320, x327, x334, x348, weight)
    # bf16 x bf16 -> f32 conv vs. f32 HIGHEST reference: relaxed tolerance.
    max_err = float(jnp.max(jnp.abs(out - ref)))
    assert jnp.allclose(out, ref, atol=2e-2, rtol=2e-2), max_err

    print("KERNEL_OK")
</pallas_src>

<mosaic_0001>
module attributes {stable_mosaic.version = 11 : i64} {
  func.func @_conv3x3_kernel(%arg0: memref<128x49xf32, #tpu.memory_space<vmem>>, %arg1: memref<32x1152xbf16, #tpu.memory_space<vmem>>, %arg2: memref<32x49xf32, #tpu.memory_space<vmem>>, %arg3: memref<128x90xbf16, #tpu.memory_space<vmem>>) attributes {dimension_semantics = [], scalar_prefetch = 0 : i64, scratch_operands = 1 : i64, tpu.core_type = #tpu.core_type<tc>} {
    %cst = arith.constant 0.000000e+00 : bf16
    %0 = vector.broadcast %cst : bf16 to vector<128x90xbf16>
    %c0 = arith.constant 0 : index
    %c0_0 = arith.constant 0 : index
    %1 = vector.load %arg3[%c0, %c0_0] : memref<128x90xbf16, #tpu.memory_space<vmem>>, vector<128x90xbf16>
    tpu.vector_store %arg3[%c0, %c0_0], %0 {strides = array<i32>} : memref<128x90xbf16, #tpu.memory_space<vmem>>, vector<128x90xbf16>,
    %c0_1 = arith.constant 0 : index
    %c0_2 = arith.constant 0 : index
    %2 = vector.load %arg0[%c0_1, %c0_2] : memref<128x49xf32, #tpu.memory_space<vmem>>, vector<128x49xf32>
    %3 = arith.truncf %2 : vector<128x49xf32> to vector<128x49xbf16>
    %4 = vector.extract_strided_slice %3 {offsets = [0, 0], sizes = [128, 7], strides = [1, 1]} : vector<128x49xbf16> to vector<128x7xbf16>
    %c0_3 = arith.constant 0 : index
    %c10 = arith.constant 10 : index
    %5 = vector.load %arg3[%c0_3, %c10] : memref<128x90xbf16, #tpu.memory_space<vmem>>, vector<128x7xbf16>
    tpu.vector_store %arg3[%c0_3, %c10], %4 {strides = array<i32>} : memref<128x90xbf16, #tpu.memory_space<vmem>>, vector<128x7xbf16>,
    %6 = vector.extract_strided_slice %3 {offsets = [0, 7], sizes = [128, 7], strides = [1, 1]} : vector<128x49xbf16> to vector<128x7xbf16>
    %c0_4 = arith.constant 0 : index
    %c19 = arith.constant 19 : index
    %7 = vector.load %arg3[%c0_4, %c19] : memref<128x90xbf16, #tpu.memory_space<vmem>>, vector<128x7xbf16>
    tpu.vector_store %arg3[%c0_4, %c19], %6 {strides = array<i32>} : memref<128x90xbf16, #tpu.memory_space<vmem>>, vector<128x7xbf16>,
    %8 = vector.extract_strided_slice %3 {offsets = [0, 14], sizes = [128, 7], strides = [1, 1]} : vector<128x49xbf16> to vector<128x7xbf16>
    %c0_5 = arith.constant 0 : index
    %c28 = arith.constant 28 : index
    %9 = vector.load %arg3[%c0_5, %c28] : memref<128x90xbf16, #tpu.memory_space<vmem>>, vector<128x7xbf16>
    tpu.vector_store %arg3[%c0_5, %c28], %8 {strides = array<i32>} : memref<128x90xbf16, #tpu.memory_space<vmem>>, vector<128x7xbf16>,
    %10 = vector.extract_strided_slice %3 {offsets = [0, 21], sizes = [128, 7], strides = [1, 1]} : vector<128x49xbf16> to vector<128x7xbf16>
    %c0_6 = arith.constant 0 : index
    %c37 = arith.constant 37 : index
    %11 = vector.load %arg3[%c0_6, %c37] : memref<128x90xbf16, #tpu.memory_space<vmem>>, vector<128x7xbf16>
    tpu.vector_store %arg3[%c0_6, %c37], %10 {strides = array<i32>} : memref<128x90xbf16, #tpu.memory_space<vmem>>, vector<128x7xbf16>,
    %12 = vector.extract_strided_slice %3 {offsets = [0, 28], sizes = [128, 7], strides = [1, 1]} : vector<128x49xbf16> to vector<128x7xbf16>
    %c0_7 = arith.constant 0 : index
    %c46 = arith.constant 46 : index
    %13 = vector.load %arg3[%c0_7, %c46] : memref<128x90xbf16, #tpu.memory_space<vmem>>, vector<128x7xbf16>
    tpu.vector_store %arg3[%c0_7, %c46], %12 {strides = array<i32>} : memref<128x90xbf16, #tpu.memory_space<vmem>>, vector<128x7xbf16>,
    %14 = vector.extract_strided_slice %3 {offsets = [0, 35], sizes = [128, 7], strides = [1, 1]} : vector<128x49xbf16> to vector<128x7xbf16>
    %c0_8 = arith.constant 0 : index
    %c55 = arith.constant 55 : index
    %15 = vector.load %arg3[%c0_8, %c55] : memref<128x90xbf16, #tpu.memory_space<vmem>>, vector<128x7xbf16>
    tpu.vector_store %arg3[%c0_8, %c55], %14 {strides = array<i32>} : memref<128x90xbf16, #tpu.memory_space<vmem>>, vector<128x7xbf16>,
    %16 = vector.extract_strided_slice %3 {offsets = [0, 42], sizes = [128, 7], strides = [1, 1]} : vector<128x49xbf16> to vector<128x7xbf16>
    %c0_9 = arith.constant 0 : index
    %c64 = arith.constant 64 : index
    %17 = vector.load %arg3[%c0_9, %c64] : memref<128x90xbf16, #tpu.memory_space<vmem>>, vector<128x7xbf16>
    tpu.vector_store %arg3[%c0_9, %c64], %16 {strides = array<i32>} : memref<128x90xbf16, #tpu.memory_space<vmem>>, vector<128x7xbf16>,
    %c0_10 = arith.constant 0 : index
    %c0_11 = arith.constant 0 : index
    %18 = vector.load %arg1[%c0_10, %c0_11] : memref<32x1152xbf16, #tpu.memory_space<vmem>>, vector<32x128xbf16>
    %c0_12 = arith.constant 0 : index
    %c0_13 = arith.constant 0 : index
    %19 = vector.load %arg3[%c0_12, %c0_13] : memref<128x90xbf16, #tpu.memory_space<vmem>>, vector<128x63xbf16>
    %cst_14 = arith.constant dense<0.000000e+00> : vector<32x63xf32>
    %20 = tpu.matmul %18, %19, %cst_14 {dimension_numbers = #tpu.dot_dimension_numbers<[1], [0], [0], [1], [0, 0, 1, 1], [], []>} : vector<32x128xbf16>, vector<128x63xbf16>, vector<32x63xf32> -> vector<32x63xf32>
    %c0_15 = arith.constant 0 : index
    %c128 = arith.constant 128 : index
    %21 = vector.load %arg1[%c0_15, %c128] : memref<32x1152xbf16, #tpu.memory_space<vmem>>, vector<32x128xbf16>
    %c0_16 = arith.constant 0 : index
    %c1 = arith.constant 1 : index
    %22 = vector.load %arg3[%c0_16, %c1] : memref<128x90xbf16, #tpu.memory_space<vmem>>, vector<128x63xbf16>
    %cst_17 = arith.constant dense<0.000000e+00> : vector<32x63xf32>
    %23 = tpu.matmul %21, %22, %cst_17 {dimension_numbers = #tpu.dot_dimension_numbers<[1], [0], [0], [1], [0, 0, 1, 1], [], []>} : vector<32x128xbf16>, vector<128x63xbf16>, vector<32x63xf32> -> vector<32x63xf32>
    %24 = arith.addf %20, %23 : vector<32x63xf32>
    %c0_18 = arith.constant 0 : index
    %c256 = arith.constant 256 : index
    %25 = vector.load %arg1[%c0_18, %c256] : memref<32x1152xbf16, #tpu.memory_space<vmem>>, vector<32x128xbf16>
    %c0_19 = arith.constant 0 : index
    %c2 = arith.constant 2 : index
    %26 = vector.load %arg3[%c0_19, %c2] : memref<128x90xbf16, #tpu.memory_space<vmem>>, vector<128x63xbf16>
    %cst_20 = arith.constant dense<0.000000e+00> : vector<32x63xf32>
    %27 = tpu.matmul %25, %26, %cst_20 {dimension_numbers = #tpu.dot_dimension_numbers<[1], [0], [0], [1], [0, 0, 1, 1], [], []>} : vector<32x128xbf16>, vector<128x63xbf16>, vector<32x63xf32> -> vector<32x63xf32>
    %28 = arith.addf %24, %27 : vector<32x63xf32>
    %c0_21 = arith.constant 0 : index
    %c384 = arith.constant 384 : index
    %29 = vector.load %arg1[%c0_21, %c384] : memref<32x1152xbf16, #tpu.memory_space<vmem>>, vector<32x128xbf16>
    %c0_22 = arith.constant 0 : index
    %c9 = arith.constant 9 : index
    %30 = vector.load %arg3[%c0_22, %c9] : memref<128x90xbf16, #tpu.memory_space<vmem>>, vector<128x63xbf16>
    %cst_23 = arith.constant dense<0.000000e+00> : vector<32x63xf32>
    %31 = tpu.matmul %29, %30, %cst_23 {dimension_numbers = #tpu.dot_dimension_numbers<[1], [0], [0], [1], [0, 0, 1, 1], [], []>} : vector<32x128xbf16>, vector<128x63xbf16>, vector<32x63xf32> -> vector<32x63xf32>
    %32 = arith.addf %28, %31 : vector<32x63xf32>
    %c0_24 = arith.constant 0 : index
    %c512 = arith.constant 512 : index
    %33 = vector.load %arg1[%c0_24, %c512] : memref<32x1152xbf16, #tpu.memory_space<vmem>>, vector<32x128xbf16>
    %c0_25 = arith.constant 0 : index
    %c10_26 = arith.constant 10 : index
    %34 = vector.load %arg3[%c0_25, %c10_26] : memref<128x90xbf16, #tpu.memory_space<vmem>>, vector<128x63xbf16>
    %cst_27 = arith.constant dense<0.000000e+00> : vector<32x63xf32>
    %35 = tpu.matmul %33, %34, %cst_27 {dimension_numbers = #tpu.dot_dimension_numbers<[1], [0], [0], [1], [0, 0, 1, 1], [], []>} : vector<32x128xbf16>, vector<128x63xbf16>, vector<32x63xf32> -> vector<32x63xf32>
    %36 = arith.addf %32, %35 : vector<32x63xf32>
    %c0_28 = arith.constant 0 : index
    %c640 = arith.constant 640 : index
    %37 = vector.load %arg1[%c0_28, %c640] : memref<32x1152xbf16, #tpu.memory_space<vmem>>, vector<32x128xbf16>
    %c0_29 = arith.constant 0 : index
    %c11 = arith.constant 11 : index
    %38 = vector.load %arg3[%c0_29, %c11] : memref<128x90xbf16, #tpu.memory_space<vmem>>, vector<128x63xbf16>
    %cst_30 = arith.constant dense<0.000000e+00> : vector<32x63xf32>
    %39 = tpu.matmul %37, %38, %cst_30 {dimension_numbers = #tpu.dot_dimension_numbers<[1], [0], [0], [1], [0, 0, 1, 1], [], []>} : vector<32x128xbf16>, vector<128x63xbf16>, vector<32x63xf32> -> vector<32x63xf32>
    %40 = arith.addf %36, %39 : vector<32x63xf32>
    %c0_31 = arith.constant 0 : index
    %c768 = arith.constant 768 : index
    %41 = vector.load %arg1[%c0_31, %c768] : memref<32x1152xbf16, #tpu.memory_space<vmem>>, vector<32x128xbf16>
    %c0_32 = arith.constant 0 : index
    %c18 = arith.constant 18 : index
    %42 = vector.load %arg3[%c0_32, %c18] : memref<128x90xbf16, #tpu.memory_space<vmem>>, vector<128x63xbf16>
    %cst_33 = arith.constant dense<0.000000e+00> : vector<32x63xf32>
    %43 = tpu.matmul %41, %42, %cst_33 {dimension_numbers = #tpu.dot_dimension_numbers<[1], [0], [0], [1], [0, 0, 1, 1], [], []>} : vector<32x128xbf16>, vector<128x63xbf16>, vector<32x63xf32> -> vector<32x63xf32>
    %44 = arith.addf %40, %43 : vector<32x63xf32>
    %c0_34 = arith.constant 0 : index
    %c896 = arith.constant 896 : index
    %45 = vector.load %arg1[%c0_34, %c896] : memref<32x1152xbf16, #tpu.memory_space<vmem>>, vector<32x128xbf16>
    %c0_35 = arith.constant 0 : index
    %c19_36 = arith.constant 19 : index
    %46 = vector.load %arg3[%c0_35, %c19_36] : memref<128x90xbf16, #tpu.memory_space<vmem>>, vector<128x63xbf16>
    %cst_37 = arith.constant dense<0.000000e+00> : vector<32x63xf32>
    %47 = tpu.matmul %45, %46, %cst_37 {dimension_numbers = #tpu.dot_dimension_numbers<[1], [0], [0], [1], [0, 0, 1, 1], [], []>} : vector<32x128xbf16>, vector<128x63xbf16>, vector<32x63xf32> -> vector<32x63xf32>
    %48 = arith.addf %44, %47 : vector<32x63xf32>
    %c0_38 = arith.constant 0 : index
    %c1024 = arith.constant 1024 : index
    %49 = vector.load %arg1[%c0_38, %c1024] : memref<32x1152xbf16, #tpu.memory_space<vmem>>, vector<32x128xbf16>
    %c0_39 = arith.constant 0 : index
    %c20 = arith.constant 20 : index
    %50 = vector.load %arg3[%c0_39, %c20] : memref<128x90xbf16, #tpu.memory_space<vmem>>, vector<128x63xbf16>
    %cst_40 = arith.constant dense<0.000000e+00> : vector<32x63xf32>
    %51 = tpu.matmul %49, %50, %cst_40 {dimension_numbers = #tpu.dot_dimension_numbers<[1], [0], [0], [1], [0, 0, 1, 1], [], []>} : vector<32x128xbf16>, vector<128x63xbf16>, vector<32x63xf32> -> vector<32x63xf32>
    %52 = arith.addf %48, %51 : vector<32x63xf32>
    %53 = vector.extract_strided_slice %52 {offsets = [0, 0], sizes = [32, 7], strides = [1, 1]} : vector<32x63xf32> to vector<32x7xf32>
    %c0_41 = arith.constant 0 : index
    %c0_42 = arith.constant 0 : index
    %54 = vector.load %arg2[%c0_41, %c0_42] : memref<32x49xf32, #tpu.memory_space<vmem>>, vector<32x7xf32>
    tpu.vector_store %arg2[%c0_41, %c0_42], %53 {strides = array<i32>} : memref<32x49xf32, #tpu.memory_space<vmem>>, vector<32x7xf32>,
    %55 = vector.extract_strided_slice %52 {offsets = [0, 9], sizes = [32, 7], strides = [1, 1]} : vector<32x63xf32> to vector<32x7xf32>
    %c0_43 = arith.constant 0 : index
    %c7 = arith.constant 7 : index
    %56 = vector.load %arg2[%c0_43, %c7] : memref<32x49xf32, #tpu.memory_space<vmem>>, vector<32x7xf32>
    tpu.vector_store %arg2[%c0_43, %c7], %55 {strides = array<i32>} : memref<32x49xf32, #tpu.memory_space<vmem>>, vector<32x7xf32>,
    %57 = vector.extract_strided_slice %52 {offsets = [0, 18], sizes = [32, 7], strides = [1, 1]} : vector<32x63xf32> to vector<32x7xf32>
    %c0_44 = arith.constant 0 : index
    %c14 = arith.constant 14 : index
    %58 = vector.load %arg2[%c0_44, %c14] : memref<32x49xf32, #tpu.memory_space<vmem>>, vector<32x7xf32>
    tpu.vector_store %arg2[%c0_44, %c14], %57 {strides = array<i32>} : memref<32x49xf32, #tpu.memory_space<vmem>>, vector<32x7xf32>,
    %59 = vector.extract_strided_slice %52 {offsets = [0, 27], sizes = [32, 7], strides = [1, 1]} : vector<32x63xf32> to vector<32x7xf32>
    %c0_45 = arith.constant 0 : index
    %c21 = arith.constant 21 : index
    %60 = vector.load %arg2[%c0_45, %c21] : memref<32x49xf32, #tpu.memory_space<vmem>>, vector<32x7xf32>
    tpu.vector_store %arg2[%c0_45, %c21], %59 {strides = array<i32>} : memref<32x49xf32, #tpu.memory_space<vmem>>, vector<32x7xf32>,
    %61 = vector.extract_strided_slice %52 {offsets = [0, 36], sizes = [32, 7], strides = [1, 1]} : vector<32x63xf32> to vector<32x7xf32>
    %c0_46 = arith.constant 0 : index
    %c28_47 = arith.constant 28 : index
    %62 = vector.load %arg2[%c0_46, %c28_47] : memref<32x49xf32, #tpu.memory_space<vmem>>, vector<32x7xf32>
    tpu.vector_store %arg2[%c0_46, %c28_47], %61 {strides = array<i32>} : memref<32x49xf32, #tpu.memory_space<vmem>>, vector<32x7xf32>,
    %63 = vector.extract_strided_slice %52 {offsets = [0, 45], sizes = [32, 7], strides = [1, 1]} : vector<32x63xf32> to vector<32x7xf32>
    %c0_48 = arith.constant 0 : index
    %c35 = arith.constant 35 : index
    %64 = vector.load %arg2[%c0_48, %c35] : memref<32x49xf32, #tpu.memory_space<vmem>>, vector<32x7xf32>
    tpu.vector_store %arg2[%c0_48, %c35], %63 {strides = array<i32>} : memref<32x49xf32, #tpu.memory_space<vmem>>, vector<32x7xf32>,
    %65 = vector.extract_strided_slice %52 {offsets = [0, 54], sizes = [32, 7], strides = [1, 1]} : vector<32x63xf32> to vector<32x7xf32>
    %c0_49 = arith.constant 0 : index
    %c42 = arith.constant 42 : index
    %66 = vector.load %arg2[%c0_49, %c42] : memref<32x49xf32, #tpu.memory_space<vmem>>, vector<32x7xf32>
    tpu.vector_store %arg2[%c0_49, %c42], %65 {strides = array<i32>} : memref<32x49xf32, #tpu.memory_space<vmem>>, vector<32x7xf32>,
    return
  }
}

</mosaic_0001>

<bundles_post_ra>
// kernel: fused_conv_cat.1
= control target key start
LH: loop header
LB: loop body
LE: loop exit
PB: predicated region body
PF: predicated region fallthrough
CT: control target
= control target key end

     0   :  { %vm12_vm0 = vcmask 736256   ;;  %v1577_v2 = vmov 0   ;;  %s1578_s13 = smov 14   ;;  %s1579_s14 = smov 10   ;;  %vm77_vm1 = vcmask 138320   ;;  %vm110_vm2 = vcmask 212120   ;;  %s2050_s0 = inlined_call_operand.vmem [shape: f32[128,49], index: 0, kind: input, shape index: {}]   ;;  %s2051_s1 = inlined_call_operand.vmem [shape: bf16[32,1152], index: 1, kind: input, shape index: {}]   ;;  %s2052_s2 = inlined_call_operand.vmem [shape: f32[32,49], index: 2, kind: output, shape index: {}]  }
   0x1   :  { %v21_v0 = vld [vmem:[%s2050_s0] sm:$0xff]  ;;  %v22_v1 = vld [vmem:[%s2050_s0 + $0x8] sm:$0xff]  ;;  %13 = vst.msk [vmem:[#allocation2] sm:$0xff] %vm12_vm0, %v1577_v2  ;;  %14 = vst.msk [vmem:[#allocation2 + $0x8] sm:$0xff] %vm12_vm0, %v1577_v2  ;;  %s1580_s19 = smov 16   ;;  %s1581_s20 = smov 12  }
   0x2   :  { %15 = vst.msk [vmem:[#allocation2 + $0x10] sm:$0xff] %vm12_vm0, %v1577_v2  ;;  %16 = vst.msk [vmem:[#allocation2 + $0x18] sm:$0xff] %vm12_vm0, %v1577_v2  ;;  %v37_v3 = vpack.c.bf16 %v22_v1, %v21_v0  ;;  %v23_v4 = vld [vmem:[%s2050_s0 + $0x10] sm:$0xff]  ;;  %v24_v5 = vld [vmem:[%s2050_s0 + $0x18] sm:$0xff]  ;;  %s1582_s21 = smov 18   ;;  %s1583_s22 = smov 20  }
   0x3   :  { %17 = vst.msk [vmem:[#allocation2 + $0x20] sm:$0xff] %vm12_vm0, %v1577_v2  ;;  %18 = vst.msk [vmem:[#allocation2 + $0x28] sm:$0xff] %vm12_vm0, %v1577_v2  ;;  %v38_v6 = vpack.c.bf16 %v24_v5, %v23_v4  ;;  %v25_v7 = vld [vmem:[%s2050_s0 + $0x20] sm:$0xff]  ;;  %v26_v8 = vld [vmem:[%s2050_s0 + $0x28] sm:$0xff]  ;;  %s1584_s27 = smov 22   ;;  %vm143_vm3 = vcmask 285920  }
   0x4   :  { %19 = vst.msk [vmem:[#allocation2 + $0x30] sm:$0xff] %vm12_vm0, %v1577_v2  ;;  %20 = vst.msk [vmem:[#allocation2 + $0x38] sm:$0xff] %vm12_vm0, %v1577_v2  ;;  %119 = vrot.lane.b32.xlu1 %v37_v3, %s1578_s13  ;;  %53 = vrot.lane.b32.xlu0 %v37_v3, %s1579_s14  ;;  %v39_v9 = vpack.c.bf16 %v26_v8, %v25_v7  ;;  %v27_v10 = vld [vmem:[%s2050_s0 + $0x30] sm:$0xff]  ;;  %v28_v11 = vld [vmem:[%s2050_s0 + $0x38] sm:$0xff]  ;;  %vm176_vm4 = vcmask 359720   ;;  %vm209_vm5 = vcmask 433520  }
   0x5   :  { %v40_v12 = vpack.c.bf16 %v28_v11, %v27_v10  ;;  %v29_v13 = vld [vmem:[%s2050_s0 + $0x40] sm:$0xff]  ;;  %v30_v14 = vld [vmem:[%s2050_s0 + $0x48] sm:$0xff]  ;;  %v31_v16 = vld [vmem:[%s2050_s0 + $0x50] sm:$0xff]  ;;  %vm242_vm6 = vcmask 507320   ;;  %vm275_vm7 = vcmask 581120   ;;  %s1588_s26 = smov 110  }
   0x6   :  { %v41_v15 = vpack.c.bf16 %v30_v14, %v29_v13  ;;  %v32_v17 = vld [vmem:[%s2050_s0 + $0x58] sm:$0xff]  ;;  %v33_v19 = vld [vmem:[%s2050_s0 + $0x60] sm:$0xff]  ;;  %v34_v20 = vld [vmem:[%s2050_s0 + $0x68] sm:$0xff]  ;;  %s1590_s28 = smov 109   ;;  %s1591_s29 = smov 119   ;;  %vm1105_vm8 = vcmask 56320  }
   0x7   :  { %v42_v18 = vpack.c.bf16 %v32_v17, %v31_v16  ;;  %v43_v21 = vpack.c.bf16 %v34_v20, %v33_v19  ;;  %v35_v22 = vld [vmem:[%s2050_s0 + $0x70] sm:$0xff]  ;;  %v36_v23 = vld [vmem:[%s2050_s0 + $0x78] sm:$0xff]  ;;  %s1585_s0 = smov 118   ;;  %s1592_s30 = smov 108   ;;  %vm1126_vm9 = vcmask 113720   ;;  %vm1143_vm10 = vcmask 171120  }
   0x8   :  { %152 = vrot.lane.b32.xlu1 %v37_v3, %s1580_s19  ;;  %86 = vrot.lane.b32.xlu0 %v37_v3, %s1581_s20  ;;  %v44_v24 = vpack.c.bf16 %v36_v23, %v35_v22  ;;  %s1593_s17 = smov 124   ;;  %s1594_s18 = smov 122   ;;  %vm1160_vm11 = vcmask 228520   ;;  %vm1193_vm12 = vcmask 343320   ;;  %vm1210_vm13 = vcmask 400720  }
   0x9   :  { %s1595_s23 = smov 120   ;;  %s1596_s24 = smov 116  }
   0xc   :  { %185 = vrot.lane.b32.xlu1 %v37_v3, %s1582_s21  ;;  %55 = vrot.lane.b32.xlu0 %v38_v6, %s1579_s14 }
  0x10   :  { %218 = vrot.lane.b32.xlu1 %v37_v3, %s1583_s22  ;;  %88 = vrot.lane.b32.xlu0 %v38_v6, %s1581_s20 }
  0x14   :  { %251 = vrot.lane.b32.xlu1 %v37_v3, %s1584_s27  ;;  %121 = vrot.lane.b32.xlu0 %v38_v6, %s1578_s13 }
  0x18   :  { %57 = vrot.lane.b32.xlu1 %v39_v9, %s1579_s14  ;;  %154 = vrot.lane.b32.xlu0 %v38_v6, %s1580_s19 }
  0x1c   :  { %90 = vrot.lane.b32.xlu1 %v39_v9, %s1581_s20  ;;  %187 = vrot.lane.b32.xlu0 %v38_v6, %s1582_s21 }
  0x20   :  { %123 = vrot.lane.b32.xlu1 %v39_v9, %s1578_s13  ;;  %220 = vrot.lane.b32.xlu0 %v38_v6, %s1583_s22 }
  0x24   :  { %156 = vrot.lane.b32.xlu1 %v39_v9, %s1580_s19  ;;  %253 = vrot.lane.b32.xlu0 %v38_v6, %s1584_s27 }
  0x28   :  { %189 = vrot.lane.b32.xlu1 %v39_v9, %s1582_s21  ;;  %59 = vrot.lane.b32.xlu0 %v40_v12, %s1579_s14 }
  0x2c   :  { %222 = vrot.lane.b32.xlu1 %v39_v9, %s1583_s22  ;;  %92 = vrot.lane.b32.xlu0 %v40_v12, %s1581_s20 }
  0x30   :  { %255 = vrot.lane.b32.xlu1 %v39_v9, %s1584_s27  ;;  %125 = vrot.lane.b32.xlu0 %v40_v12, %s1578_s13 }
  0x34   :  { %61 = vrot.lane.b32.xlu1 %v41_v15, %s1579_s14  ;;  %158 = vrot.lane.b32.xlu0 %v40_v12, %s1580_s19 }
  0x38   :  { %94 = vrot.lane.b32.xlu1 %v41_v15, %s1581_s20  ;;  %191 = vrot.lane.b32.xlu0 %v40_v12, %s1582_s21 }
  0x3c   :  { %127 = vrot.lane.b32.xlu1 %v41_v15, %s1578_s13  ;;  %224 = vrot.lane.b32.xlu0 %v40_v12, %s1583_s22 }
  0x40   :  { %160 = vrot.lane.b32.xlu1 %v41_v15, %s1580_s19  ;;  %257 = vrot.lane.b32.xlu0 %v40_v12, %s1584_s27 }
  0x44   :  { %193 = vrot.lane.b32.xlu1 %v41_v15, %s1582_s21  ;;  %63 = vrot.lane.b32.xlu0 %v42_v18, %s1579_s14 }
  0x48   :  { %226 = vrot.lane.b32.xlu1 %v41_v15, %s1583_s22  ;;  %96 = vrot.lane.b32.xlu0 %v42_v18, %s1581_s20 }
  0x4c   :  { %259 = vrot.lane.b32.xlu1 %v41_v15, %s1584_s27  ;;  %129 = vrot.lane.b32.xlu0 %v42_v18, %s1578_s13 }
  0x50   :  { %65 = vrot.lane.b32.xlu1 %v43_v21, %s1579_s14  ;;  %162 = vrot.lane.b32.xlu0 %v42_v18, %s1580_s19 }
  0x54   :  { %98 = vrot.lane.b32.xlu1 %v43_v21, %s1581_s20  ;;  %195 = vrot.lane.b32.xlu0 %v42_v18, %s1582_s21 }
  0x58   :  { %131 = vrot.lane.b32.xlu1 %v43_v21, %s1578_s13  ;;  %228 = vrot.lane.b32.xlu0 %v42_v18, %s1583_s22 }
  0x5c   :  { %164 = vrot.lane.b32.xlu1 %v43_v21, %s1580_s19  ;;  %261 = vrot.lane.b32.xlu0 %v42_v18, %s1584_s27 }
  0x60   :  { %197 = vrot.lane.b32.xlu1 %v43_v21, %s1582_s21  ;;  %67 = vrot.lane.b32.xlu0 %v44_v24, %s1579_s14 }
  0x64   :  { %230 = vrot.lane.b32.xlu1 %v43_v21, %s1583_s22  ;;  %100 = vrot.lane.b32.xlu0 %v44_v24, %s1581_s20  ;;  %s1587_s20 = smov 117  }
  0x68   :  { %263 = vrot.lane.b32.xlu1 %v43_v21, %s1584_s27  ;;  %133 = vrot.lane.b32.xlu0 %v44_v24, %s1578_s13  ;;  %v1559_v21 = vld [vmem:[%s2051_s1 + $0x10] ss:$36 sps:$4 sm:$0xff]  }
  0x69   :  { %1423 = vmatprep.mubr.bf16.mxu0 %v1559_v21 }
  0x6c   :  { %166 = vrot.lane.b32.xlu0 %v44_v24, %s1580_s19  ;;  %199 = vrot.lane.b32.xlu1 %v44_v24, %s1582_s21  ;;  %s1586_s19 = smov 127  }
  0x70   :  { %232 = vrot.lane.b32.xlu0 %v44_v24, %s1583_s22  ;;  %265 = vrot.lane.b32.xlu1 %v44_v24, %s1584_s27  ;;  %s1589_s27 = smov 126  }
  0x76   :  { %v120_v25 = vpop.permute.xlu1 %119  ;;  %v54_v26 = vpop.permute.xlu0 %53 }
  0x77   :  { %78 = vst.msk [vmem:[#allocation2] sm:$0xff] %vm77_vm1, %v54_v26  ;;  %v1561_v26 = vld [vmem:[%s2051_s1 + $0x4] ss:$36 sps:$4 sm:$0xff]  }
  0x78   :  { %1343 = vmatprep.mubr.bf16.mxu1 %v1561_v26  ;;  %v1573_v26 = vld [vmem:[%s2051_s1 + $0xc] ss:$36 sps:$4 sm:$0xff]  }
  0x7a   :  { %v153_v27 = vpop.permute.xlu1 %152  ;;  %v87_v28 = vpop.permute.xlu0 %86 }
  0x7b   :  { %111 = vst.msk [vmem:[#allocation2] sm:$0xff] %vm110_vm2, %v87_v28 }
  0x7c   :  { %144 = vst.msk [vmem:[#allocation2] sm:$0xff] %vm143_vm3, %v120_v25 }
  0x7d   :  { %177 = vst.msk [vmem:[#allocation2] sm:$0xff] %vm176_vm4, %v153_v27 }
  0x7e   :  { %v186_v29 = vpop.permute.xlu1 %185  ;;  %v56_v30 = vpop.permute.xlu0 %55 }
  0x7f   :  { %210 = vst.msk [vmem:[#allocation2] sm:$0xff] %vm209_vm5, %v186_v29 }
  0x80   :  { %79 = vst.msk [vmem:[#allocation2 + $0x8] sm:$0xff] %vm77_vm1, %v56_v30 }
  0x82   :  { %v219_v31 = vpop.permute.xlu1 %218  ;;  %v89_v32 = vpop.permute.xlu0 %88 }
  0x83   :  { %243 = vst.msk [vmem:[#allocation2] sm:$0xff] %vm242_vm6, %v219_v31 }
  0x84   :  { %112 = vst.msk [vmem:[#allocation2 + $0x8] sm:$0xff] %vm110_vm2, %v89_v32 }
  0x86   :  { %v252_v33 = vpop.permute.xlu1 %251  ;;  %v122_v34 = vpop.permute.xlu0 %121 }
  0x87   :  { %276 = vst.msk [vmem:[#allocation2] sm:$0xff] %vm275_vm7, %v252_v33 }
  0x88   :  { %145 = vst.msk [vmem:[#allocation2 + $0x8] sm:$0xff] %vm143_vm3, %v122_v34 }
  0x8a   :  { %v58_v35 = vpop.permute.xlu1 %57  ;;  %v155_v36 = vpop.permute.xlu0 %154 }
  0x8b   :  { %80 = vst.msk [vmem:[#allocation2 + $0x10] sm:$0xff] %vm77_vm1, %v58_v35 }
  0x8c   :  { %178 = vst.msk [vmem:[#allocation2 + $0x8] sm:$0xff] %vm176_vm4, %v155_v36 }
  0x8e   :  { %v91_v37 = vpop.permute.xlu1 %90  ;;  %v188_v38 = vpop.permute.xlu0 %187  ;;  %v1728_v39 = vld [vmem:[#allocation2] sm:$0xff] }
  0x8f   :  { %113 = vst.msk [vmem:[#allocation2 + $0x10] sm:$0xff] %vm110_vm2, %v91_v37  ;;  %656 = vrot.lane.b32.xlu0 %v1728_v39, %s1585_s0  ;;  %v1560_v37 = vld [vmem:[%s2051_s1 + $0x58] ss:$36 sps:$4 sm:$0xff]  }
  0x90   :  { %211 = vst.msk [vmem:[#allocation2 + $0x8] sm:$0xff] %vm209_vm5, %v188_v38 }
  0x92   :  { %v124_v40 = vpop.permute.xlu1 %123  ;;  %v221_v41 = vpop.permute.xlu0 %220 }
  0x93   :  { %146 = vst.msk [vmem:[#allocation2 + $0x10] sm:$0xff] %vm143_vm3, %v124_v40  ;;  %v1563_v40 = vld [vmem:[%s2051_s1 + $0x14] ss:$36 sps:$4 sm:$0xff]  }
  0x94   :  { %244 = vst.msk [vmem:[#allocation2 + $0x8] sm:$0xff] %vm242_vm6, %v221_v41 }
  0x96   :  { %v157_v42 = vpop.permute.xlu1 %156  ;;  %v254_v43 = vpop.permute.xlu0 %253 }
  0x97   :  { %179 = vst.msk [vmem:[#allocation2 + $0x10] sm:$0xff] %vm176_vm4, %v157_v42 }
  0x98   :  { %277 = vst.msk [vmem:[#allocation2 + $0x8] sm:$0xff] %vm275_vm7, %v254_v43 }
  0x9a   :  { %v190_v44 = vpop.permute.xlu1 %189  ;;  %v60_v45 = vpop.permute.xlu0 %59 }
  0x9b   :  { %212 = vst.msk [vmem:[#allocation2 + $0x10] sm:$0xff] %vm209_vm5, %v190_v44 }
  0x9c   :  { %81 = vst.msk [vmem:[#allocation2 + $0x18] sm:$0xff] %vm77_vm1, %v60_v45 }
  0x9e   :  { %v223_v46 = vpop.permute.xlu1 %222  ;;  %v93_v47 = vpop.permute.xlu0 %92 }
  0x9f   :  { %v1740_v48 = vld [vmem:[#allocation2 + $0x8] sm:$0xff]  ;;  %245 = vst.msk [vmem:[#allocation2 + $0x10] sm:$0xff] %vm242_vm6, %v223_v46 }
  0xa0   :  { %114 = vst.msk [vmem:[#allocation2 + $0x18] sm:$0xff] %vm110_vm2, %v93_v47  ;;  %658 = vrot.lane.b32.xlu1 %v1740_v48, %s1585_s0 }
  0xa2   :  { %v256_v49 = vpop.permute.xlu1 %255  ;;  %v126_v50 = vpop.permute.xlu0 %125 }
  0xa3   :  { %278 = vst.msk [vmem:[#allocation2 + $0x10] sm:$0xff] %vm275_vm7, %v256_v49 }
  0xa4   :  { %147 = vst.msk [vmem:[#allocation2 + $0x18] sm:$0xff] %vm143_vm3, %v126_v50 }
  0xa6   :  { %v62_v51 = vpop.permute.xlu1 %61  ;;  %v159_v52 = vpop.permute.xlu0 %158 }
  0xa7   :  { %82 = vst.msk [vmem:[#allocation2 + $0x20] sm:$0xff] %vm77_vm1, %v62_v51 }
  0xa8   :  { %180 = vst.msk [vmem:[#allocation2 + $0x18] sm:$0xff] %vm176_vm4, %v159_v52 }
  0xaa   :  { %v95_v53 = vpop.permute.xlu1 %94  ;;  %v192_v54 = vpop.permute.xlu0 %191  ;;  %v1750_v55 = vld [vmem:[#allocation2 + $0x10] sm:$0xff] }
  0xab   :  { %115 = vst.msk [vmem:[#allocation2 + $0x20] sm:$0xff] %vm110_vm2, %v95_v53  ;;  %660 = vrot.lane.b32.xlu0 %v1750_v55, %s1585_s0  ;;  %v1562_v53 = vld [vmem:[%s2051_s1 + $0x4c] ss:$36 sps:$4 sm:$0xff]  }
  0xac   :  { %213 = vst.msk [vmem:[#allocation2 + $0x18] sm:$0xff] %vm209_vm5, %v192_v54  ;;  %v1565_v54 = vld [vmem:[%s2051_s1] ss:$36 sps:$4 sm:$0xff]  }
  0xae   :  { %v128_v56 = vpop.permute.xlu1 %127  ;;  %v225_v57 = vpop.permute.xlu0 %224 }
  0xaf   :  { %148 = vst.msk [vmem:[#allocation2 + $0x20] sm:$0xff] %vm143_vm3, %v128_v56 }
  0xb0   :  { %246 = vst.msk [vmem:[#allocation2 + $0x18] sm:$0xff] %vm242_vm6, %v225_v57 }
  0xb2   :  { %v161_v58 = vpop.permute.xlu1 %160  ;;  %v258_v59 = vpop.permute.xlu0 %257 }
  0xb3   :  { %181 = vst.msk [vmem:[#allocation2 + $0x20] sm:$0xff] %vm176_vm4, %v161_v58 }
  0xb4   :  { %279 = vst.msk [vmem:[#allocation2 + $0x18] sm:$0xff] %vm275_vm7, %v258_v59 }
  0xb6   :  { %v194_v60 = vpop.permute.xlu1 %193  ;;  %v64_v61 = vpop.permute.xlu0 %63 }
  0xb7   :  { %214 = vst.msk [vmem:[#allocation2 + $0x20] sm:$0xff] %vm209_vm5, %v194_v60  ;;  %v1564_v60 = vld [vmem:[%s2051_s1 + $0x5c] ss:$36 sps:$4 sm:$0xff]  }
  0xb8   :  { %83 = vst.msk [vmem:[#allocation2 + $0x28] sm:$0xff] %vm77_vm1, %v64_v61 }
  0xba   :  { %v227_v62 = vpop.permute.xlu1 %226  ;;  %v97_v63 = vpop.permute.xlu0 %96 }
  0xbb   :  { %v1762_v0 = vld [vmem:[#allocation2 + $0x18] sm:$0xff]  ;;  %247 = vst.msk [vmem:[#allocation2 + $0x20] sm:$0xff] %vm242_vm6, %v227_v62 }
  0xbc   :  { %116 = vst.msk [vmem:[#allocation2 + $0x28] sm:$0xff] %vm110_vm2, %v97_v63  ;;  %662 = vrot.lane.b32.xlu1 %v1762_v0, %s1585_s0 }
  0xbe   :  { %v260_v1 = vpop.permute.xlu1 %259  ;;  %v130_v2 = vpop.permute.xlu0 %129 }
  0xbf   :  { %280 = vst.msk [vmem:[#allocation2 + $0x20] sm:$0xff] %vm275_vm7, %v260_v1 }
  0xc0   :  { %149 = vst.msk [vmem:[#allocation2 + $0x28] sm:$0xff] %vm143_vm3, %v130_v2 }
  0xc2   :  { %v66_v3 = vpop.permute.xlu1 %65  ;;  %v163_v4 = vpop.permute.xlu0 %162 }
  0xc3   :  { %84 = vst.msk [vmem:[#allocation2 + $0x30] sm:$0xff] %vm77_vm1, %v66_v3 }
  0xc4   :  { %182 = vst.msk [vmem:[#allocation2 + $0x28] sm:$0xff] %vm176_vm4, %v163_v4 }
  0xc6   :  { %v99_v5 = vpop.permute.xlu1 %98  ;;  %v196_v6 = vpop.permute.xlu0 %195  ;;  %v1772_v7 = vld [vmem:[#allocation2 + $0x20] sm:$0xff] }
  0xc7   :  { %117 = vst.msk [vmem:[#allocation2 + $0x30] sm:$0xff] %vm110_vm2, %v99_v5  ;;  %664 = vrot.lane.b32.xlu0 %v1772_v7, %s1585_s0 }
  0xc8   :  { %215 = vst.msk [vmem:[#allocation2 + $0x28] sm:$0xff] %vm209_vm5, %v196_v6 }
  0xca   :  { %v132_v8 = vpop.permute.xlu1 %131  ;;  %v229_v9 = vpop.permute.xlu0 %228 }
  0xcb   :  { %150 = vst.msk [vmem:[#allocation2 + $0x30] sm:$0xff] %vm143_vm3, %v132_v8  ;;  %v1569_v8 = vld [vmem:[%s2051_s1 + $0x8] ss:$36 sps:$4 sm:$0xff]  }
  0xcc   :  { %248 = vst.msk [vmem:[#allocation2 + $0x28] sm:$0xff] %vm242_vm6, %v229_v9 }
  0xce   :  { %v165_v10 = vpop.permute.xlu1 %164  ;;  %v262_v11 = vpop.permute.xlu0 %261 }
  0xcf   :  { %183 = vst.msk [vmem:[#allocation2 + $0x30] sm:$0xff] %vm176_vm4, %v165_v10 }
  0xd0   :  { %281 = vst.msk [vmem:[#allocation2 + $0x28] sm:$0xff] %vm275_vm7, %v262_v11 }
  0xd2   :  { %v198_v12 = vpop.permute.xlu1 %197  ;;  %v68_v13 = vpop.permute.xlu0 %67 }
  0xd3   :  { %216 = vst.msk [vmem:[#allocation2 + $0x30] sm:$0xff] %vm209_vm5, %v198_v12 }
  0xd4   :  { %85 = vst.msk [vmem:[#allocation2 + $0x38] sm:$0xff] %vm77_vm1, %v68_v13  ;;  %v1568_v13 = vld [vmem:[%s2051_s1 + $0x60] ss:$36 sps:$4 sm:$0xff]  }
  0xd6   :  { %v231_v14 = vpop.permute.xlu1 %230  ;;  %v101_v15 = vpop.permute.xlu0 %100 }
  0xd7   :  { %v1784_v16 = vld [vmem:[#allocation2 + $0x28] sm:$0xff]  ;;  %249 = vst.msk [vmem:[#allocation2 + $0x30] sm:$0xff] %vm242_vm6, %v231_v14 }
  0xd8   :  { %118 = vst.msk [vmem:[#allocation2 + $0x38] sm:$0xff] %vm110_vm2, %v101_v15  ;;  %666 = vrot.lane.b32.xlu1 %v1784_v16, %s1585_s0  ;;  %v1571_v15 = vld [vmem:[%s2051_s1 + $0x1c] ss:$36 sps:$4 sm:$0xff]  }
  0xda   :  { %v264_v17 = vpop.permute.xlu1 %263  ;;  %v134_v18 = vpop.permute.xlu0 %133 }
  0xdb   :  { %282 = vst.msk [vmem:[#allocation2 + $0x30] sm:$0xff] %vm275_vm7, %v264_v17 }
  0xdc   :  { %151 = vst.msk [vmem:[#allocation2 + $0x38] sm:$0xff] %vm143_vm3, %v134_v18 }
  0xde   :  { %v167_v19 = vpop.permute.xlu0 %166  ;;  %v200_v20 = vpop.permute.xlu1 %199 }
  0xdf   :  { %184 = vst.msk [vmem:[#allocation2 + $0x38] sm:$0xff] %vm176_vm4, %v167_v19 }
  0xe0   :  { %217 = vst.msk [vmem:[#allocation2 + $0x38] sm:$0xff] %vm209_vm5, %v200_v20 }
  0xe2   :  { %v233_v22 = vpop.permute.xlu0 %232  ;;  %v266_v23 = vpop.permute.xlu1 %265  ;;  %v1797_v24 = vld [vmem:[#allocation2 + $0x30] sm:$0xff] }
  0xe3   :  { %250 = vst.msk [vmem:[#allocation2 + $0x38] sm:$0xff] %vm242_vm6, %v233_v22  ;;  %668 = vrot.lane.b32.xlu0 %v1797_v24, %s1585_s0 }
  0xe4   :  { %283 = vst.msk [vmem:[#allocation2 + $0x38] sm:$0xff] %vm275_vm7, %v266_v23 }
  0xe7   :  { %320 = vrot.lane.b32.xlu0 %v1728_v39, %s1586_s19 }
  0xeb   :  { %322 = vrot.lane.b32.xlu0 %v1740_v48, %s1586_s19  ;;  %v1805_v25 = vld [vmem:[#allocation2 + $0x38] sm:$0xff] }
  0xec   :  { %670 = vrot.lane.b32.xlu1 %v1805_v25, %s1585_s0 }
  0xef   :  { %324 = vrot.lane.b32.xlu0 %v1750_v55, %s1586_s19 }
  0xf0   :  { %749 = vrot.lane.b32.xlu1 %v1728_v39, %s1587_s20 }
  0xf3   :  { %326 = vrot.lane.b32.xlu0 %v1762_v0, %s1586_s19 }
  0xf4   :  { %751 = vrot.lane.b32.xlu1 %v1740_v48, %s1587_s20 }
  0xf7   :  { %328 = vrot.lane.b32.xlu0 %v1772_v7, %s1586_s19 }
  0xf8   :  { %753 = vrot.lane.b32.xlu1 %v1750_v55, %s1587_s20 }
  0xfb   :  { %330 = vrot.lane.b32.xlu0 %v1784_v16, %s1586_s19 }
  0xfc   :  { %755 = vrot.lane.b32.xlu1 %v1762_v0, %s1587_s20 }
  0xff   :  { %332 = vrot.lane.b32.xlu0 %v1797_v24, %s1586_s19 }
 0x100   :  { %757 = vrot.lane.b32.xlu1 %v1772_v7, %s1587_s20 }
 0x101   :  { %v657_v27 = vpop.permute.xlu0 %656 }
 0x102   :  { %1407 = vmatprep.subr.bf16.mxu0 %v657_v27 }
 0x103   :  { %334 = vrot.lane.b32.xlu0 %v1805_v25, %s1586_s19  ;;  %1408 = vmatpush3.bf16.msra.mxu0 %v657_v27 }
 0x104   :  { %759 = vrot.lane.b32.xlu1 %v1784_v16, %s1587_s20 }
 0x107   :  { %842 = vrot.lane.b32.xlu0 %v1728_v39, %s1588_s26 }
 0x108   :  { %761 = vrot.lane.b32.xlu1 %v1797_v24, %s1587_s20 }
 0x10b   :  { %846 = vrot.lane.b32.xlu0 %v1750_v55, %s1588_s26 }
 0x10c   :  { %763 = vrot.lane.b32.xlu1 %v1805_v25, %s1587_s20 }
 0x10f   :  { %850 = vrot.lane.b32.xlu0 %v1772_v7, %s1588_s26 }
 0x110   :  { %844 = vrot.lane.b32.xlu1 %v1740_v48, %s1588_s26 }
 0x112   :  { %v659_v28 = vpop.permute.xlu1 %658 }
 0x113   :  { %1409 = vmatprep.subr.bf16.mxu0 %v659_v28  ;;  %854 = vrot.lane.b32.xlu0 %v1797_v24, %s1588_s26 }
 0x114   :  { %1410 = vmatpush3.bf16.msra.mxu0 %v659_v28  ;;  %848 = vrot.lane.b32.xlu1 %v1762_v0, %s1588_s26 }
 0x117   :  { %470 = vrot.lane.b32.xlu0 %v1728_v39, %s1589_s27 }
 0x118   :  { %852 = vrot.lane.b32.xlu1 %v1784_v16, %s1588_s26 }
 0x11b   :  { %472 = vrot.lane.b32.xlu0 %v1740_v48, %s1589_s27 }
 0x11c   :  { %856 = vrot.lane.b32.xlu1 %v1805_v25, %s1588_s26 }
 0x11d   :  { %v661_v29 = vpop.permute.xlu0 %660 }
 0x11e   :  { %1411 = vmatprep.subr.bf16.mxu0 %v661_v29 }
 0x11f   :  { %474 = vrot.lane.b32.xlu0 %v1750_v55, %s1589_s27  ;;  %1412 = vmatpush3.bf16.msra.mxu0 %v661_v29 }
 0x120   :  { %935 = vrot.lane.b32.xlu1 %v1728_v39, %s1590_s28 }
 0x123   :  { %476 = vrot.lane.b32.xlu0 %v1762_v0, %s1589_s27 }
 0x124   :  { %937 = vrot.lane.b32.xlu1 %v1740_v48, %s1590_s28 }
 0x127   :  { %478 = vrot.lane.b32.xlu0 %v1772_v7, %s1589_s27 }
 0x128   :  { %939 = vrot.lane.b32.xlu1 %v1750_v55, %s1590_s28 }
 0x12b   :  { %480 = vrot.lane.b32.xlu0 %v1784_v16, %s1589_s27 }
 0x12c   :  { %941 = vrot.lane.b32.xlu1 %v1762_v0, %s1590_s28 }
 0x12e   :  { %v663_v30 = vpop.permute.xlu1 %662 }
 0x12f   :  { %1413 = vmatprep.subr.bf16.mxu0 %v663_v30  ;;  %482 = vrot.lane.b32.xlu0 %v1797_v24, %s1589_s27 }
 0x130   :  { %1414 = vmatpush3.bf16.msra.mxu0 %v663_v30  ;;  %943 = vrot.lane.b32.xlu1 %v1772_v7, %s1590_s28  ;;  %v1572_v30 = vld [vmem:[%s2051_s1 + $0x64] ss:$36 sps:$4 sm:$0xff]  }
 0x133   :  { %484 = vrot.lane.b32.xlu0 %v1805_v25, %s1589_s27 }
 0x134   :  { %945 = vrot.lane.b32.xlu1 %v1784_v16, %s1590_s28 }
 0x137   :  { %563 = vrot.lane.b32.xlu0 %v1728_v39, %s1591_s29 }
 0x138   :  { %947 = vrot.lane.b32.xlu1 %v1797_v24, %s1590_s28 }
 0x139   :  { %v665_v31 = vpop.permute.xlu0 %664 }
 0x13a   :  { %1415 = vmatprep.subr.bf16.mxu0 %v665_v31 }
 0x13b   :  { %565 = vrot.lane.b32.xlu0 %v1740_v48, %s1591_s29  ;;  %1416 = vmatpush3.bf16.msra.mxu0 %v665_v31 }
 0x13c   :  { %949 = vrot.lane.b32.xlu1 %v1805_v25, %s1590_s28 }
 0x13f   :  { %567 = vrot.lane.b32.xlu0 %v1750_v55, %s1591_s29 }
 0x140   :  { %1028 = vrot.lane.b32.xlu1 %v1728_v39, %s1592_s30 }
 0x143   :  { %569 = vrot.lane.b32.xlu0 %v1762_v0, %s1591_s29 }
 0x144   :  { %1030 = vrot.lane.b32.xlu1 %v1740_v48, %s1592_s30 }
 0x147   :  { %571 = vrot.lane.b32.xlu0 %v1772_v7, %s1591_s29 }
 0x148   :  { %1032 = vrot.lane.b32.xlu1 %v1750_v55, %s1592_s30 }
 0x14a   :  { %v667_v32 = vpop.permute.xlu1 %666 }
 0x14b   :  { %1417 = vmatprep.subr.bf16.mxu0 %v667_v32  ;;  %573 = vrot.lane.b32.xlu0 %v1784_v16, %s1591_s29 }
 0x14c   :  { %1418 = vmatpush3.bf16.msra.mxu0 %v667_v32  ;;  %1034 = vrot.lane.b32.xlu1 %v1762_v0, %s1592_s30  ;;  %v1575_v32 = vld [vmem:[%s2051_s1 + $0x20] ss:$36 sps:$4 sm:$0xff]  }
 0x14f   :  { %575 = vrot.lane.b32.xlu0 %v1797_v24, %s1591_s29 }
 0x150   :  { %1036 = vrot.lane.b32.xlu1 %v1772_v7, %s1592_s30 }
 0x153   :  { %577 = vrot.lane.b32.xlu0 %v1805_v25, %s1591_s29 }
 0x154   :  { %1038 = vrot.lane.b32.xlu1 %v1784_v16, %s1592_s30 }
 0x155   :  { %v669_v33 = vpop.permute.xlu0 %668 }
 0x156   :  { %1419 = vmatprep.subr.bf16.mxu0 %v669_v33 }
 0x157   :  { %1420 = vmatpush3.bf16.msra.mxu0 %v669_v33 }
 0x158   :  { %1040 = vrot.lane.b32.xlu1 %v1797_v24, %s1592_s30 }
 0x159   :  { %v321_v34 = vpop.permute.xlu0 %320 }
 0x15a   :  { %1327 = vmatprep.subr.bf16.mxu1 %v321_v34 }
 0x15b   :  { %1328 = vmatpush3.bf16.msra.mxu1 %v321_v34 }
 0x15c   :  { %1042 = vrot.lane.b32.xlu1 %v1805_v25, %s1592_s30 }
 0x15d   :  { %v323_v35 = vpop.permute.xlu0 %322 }
 0x15e   :  { %v671_v36 = vpop.permute.xlu1 %670  ;;  %1329 = vmatprep.subr.bf16.mxu1 %v323_v35 }
 0x15f   :  { %1330 = vmatpush3.bf16.msra.mxu1 %v323_v35  ;;  %1421 = vmatprep.subr.bf16.mxu0 %v671_v36 }
 0x160   :  { %1422 = vmatpush3.bf16.msra.mxu0 %v671_v36 }
 0x161   :  { %v325_v38 = vpop.permute.xlu0 %324 }
 0x162   :  { %v750_v41 = vpop.permute.xlu1 %749  ;;  %1331 = vmatprep.subr.bf16.mxu1 %v325_v38 }
 0x163   :  { %1332 = vmatpush3.bf16.msra.mxu1 %v325_v38  ;;  %1427 = vmatprep.subr.bf16.mxu0 %v750_v41 }
 0x164   :  { %1424 = vmatmul.mubr.bf16.vlgmr.msra.gmra.mrb[0].mxu0 %v1560_v37 }
 0x165   :  { %1428 = vmatpush3.bf16.msra.mxu0 %v750_v41  ;;  %v327_v42 = vpop.permute.xlu0 %326  ;;  %1443 = vmatprep.mubr.bf16.mxu0 %v1563_v40  ;;  %v1574_v40 = vld [vmem:[%s2051_s1 + $0x54] ss:$36 sps:$4 sm:$0xff]  }
 0x166   :  { %v752_v43 = vpop.permute.xlu1 %751  ;;  %1333 = vmatprep.subr.bf16.mxu1 %v327_v42 }
 0x167   :  { %1334 = vmatpush3.bf16.msra.mxu1 %v327_v42  ;;  %1429 = vmatprep.subr.bf16.mxu0 %v752_v43 }
 0x169   :  { %1430 = vmatpush3.bf16.msra.mxu0 %v752_v43  ;;  %v329_v44 = vpop.permute.xlu0 %328  ;;  %v1576_v43 = vld [vmem:[%s2051_s1 + $0x68] ss:$36 sps:$4 sm:$0xff]  }
 0x16a   :  { %v754_v45 = vpop.permute.xlu1 %753  ;;  %1335 = vmatprep.subr.bf16.mxu1 %v329_v44 }
 0x16b   :  { %1336 = vmatpush3.bf16.msra.mxu1 %v329_v44  ;;  %1431 = vmatprep.subr.bf16.mxu0 %v754_v45 }
 0x16d   :  { %1432 = vmatpush3.bf16.msra.mxu0 %v754_v45  ;;  %v331_v46 = vpop.permute.xlu0 %330 }
 0x16e   :  { %v756_v47 = vpop.permute.xlu1 %755  ;;  %1337 = vmatprep.subr.bf16.mxu1 %v331_v46 }
 0x16f   :  { %1338 = vmatpush3.bf16.msra.mxu1 %v331_v46  ;;  %1433 = vmatprep.subr.bf16.mxu0 %v756_v47 }
 0x171   :  { %1434 = vmatpush3.bf16.msra.mxu0 %v756_v47  ;;  %v333_v49 = vpop.permute.xlu0 %332 }
 0x172   :  { %v758_v50 = vpop.permute.xlu1 %757  ;;  %1339 = vmatprep.subr.bf16.mxu1 %v333_v49 }
 0x173   :  { %1340 = vmatpush3.bf16.msra.mxu1 %v333_v49  ;;  %1435 = vmatprep.subr.bf16.mxu0 %v758_v50 }
 0x175   :  { %1436 = vmatpush3.bf16.msra.mxu0 %v758_v50  ;;  %v335_v51 = vpop.permute.xlu0 %334 }
 0x176   :  { %v760_v52 = vpop.permute.xlu1 %759  ;;  %1341 = vmatprep.subr.bf16.mxu1 %v335_v51 }
 0x177   :  { %1342 = vmatpush3.bf16.msra.mxu1 %v335_v51  ;;  %1437 = vmatprep.subr.bf16.mxu0 %v760_v52 }
 0x178   :  { %1347 = vmatprep.subr.bf16.mxu1 %v1728_v39 }
 0x179   :  { %1438 = vmatpush3.bf16.msra.mxu0 %v760_v52  ;;  %v843_v56 = vpop.permute.xlu0 %842 }
 0x17a   :  { %v762_v57 = vpop.permute.xlu1 %761  ;;  %1344 = vmatmul.mubr.bf16.vlgmr.msra.gmra.mrb[0].mxu1 %v1562_v53 }
 0x17b   :  { %1348 = vmatpush3.bf16.msra.mxu1 %v1728_v39  ;;  %1439 = vmatprep.subr.bf16.mxu0 %v762_v57  ;;  %v1567_v39 = vld [vmem:[%s2051_s1 + $0x18] ss:$36 sps:$4 sm:$0xff]  }
 0x17c   :  { %1349 = vmatprep.subr.bf16.mxu1 %v1740_v48  ;;  %1363 = vmatprep.mubr.bf16.mxu1 %v1565_v54 }
 0x17d   :  { %1440 = vmatpush3.bf16.msra.mxu0 %v762_v57  ;;  %v847_v58 = vpop.permute.xlu0 %846 }
 0x17e   :  { %v764_v59 = vpop.permute.xlu1 %763 }
 0x17f   :  { %1350 = vmatpush3.bf16.msra.mxu1 %v1740_v48  ;;  %1441 = vmatprep.subr.bf16.mxu0 %v764_v59 }
 0x180   :  { %1351 = vmatprep.subr.bf16.mxu1 %v1750_v55 }
 0x181   :  { %1442 = vmatpush3.bf16.msra.mxu0 %v764_v59  ;;  %v851_v61 = vpop.permute.xlu0 %850 }
 0x182   :  { %1447 = vmatprep.subr.bf16.mxu0 %v843_v56  ;;  %v845_v62 = vpop.permute.xlu1 %844 }
 0x183   :  { %1352 = vmatpush3.bf16.msra.mxu1 %v1750_v55 }
 0x184   :  { %1353 = vmatprep.subr.bf16.mxu1 %v1762_v0  ;;  %1444 = vmatmul.mubr.bf16.vlgmr.msra.gmra.mrb[0].mxu0 %v1564_v60 }
 0x185   :  { %1448 = vmatpush3.bf16.msra.mxu0 %v843_v56  ;;  %v855_v48 = vpop.permute.xlu0 %854  ;;  %1463 = vmatprep.mubr.bf16.mxu0 %v1567_v39 }
 0x186   :  { %1449 = vmatprep.subr.bf16.mxu0 %v845_v62  ;;  %v849_v63 = vpop.permute.xlu1 %848 }
 0x187   :  { %1354 = vmatpush3.bf16.msra.mxu1 %v1762_v0 }
 0x188   :  { %1355 = vmatprep.subr.bf16.mxu1 %v1772_v7 }
 0x189   :  { %1450 = vmatpush3.bf16.msra.mxu0 %v845_v62  ;;  %v471_v1 = vpop.permute.xlu0 %470 }
 0x18a   :  { %1451 = vmatprep.subr.bf16.mxu0 %v847_v58  ;;  %v853_v2 = vpop.permute.xlu1 %852 }
 0x18b   :  { %1356 = vmatpush3.bf16.msra.mxu1 %v1772_v7  ;;  %v1566_v7 = vld [vmem:[%s2051_s1 + $0x48] ss:$36 sps:$4 sm:$0xff]  }
 0x18c   :  { %1357 = vmatprep.subr.bf16.mxu1 %v1784_v16 }
 0x18d   :  { %1452 = vmatpush3.bf16.msra.mxu0 %v847_v58  ;;  %v473_v55 = vpop.permute.xlu0 %472 }
 0x18e   :  { %1453 = vmatprep.subr.bf16.mxu0 %v849_v63  ;;  %v857_v3 = vpop.permute.xlu1 %856 }
 0x18f   :  { %1358 = vmatpush3.bf16.msra.mxu1 %v1784_v16 }
 0x190   :  { %1359 = vmatprep.subr.bf16.mxu1 %v1797_v24 }
 0x191   :  { %1454 = vmatpush3.bf16.msra.mxu0 %v849_v63  ;;  %v475_v0 = vpop.permute.xlu0 %474 }
 0x192   :  { %1455 = vmatprep.subr.bf16.mxu0 %v851_v61  ;;  %v936_v4 = vpop.permute.xlu1 %935 }
 0x193   :  { %1360 = vmatpush3.bf16.msra.mxu1 %v1797_v24 }
 0x194   :  { %1361 = vmatprep.subr.bf16.mxu1 %v1805_v25 }
 0x195   :  { %1456 = vmatpush3.bf16.msra.mxu0 %v851_v61  ;;  %v477_v5 = vpop.permute.xlu0 %476 }
 0x196   :  { %1457 = vmatprep.subr.bf16.mxu0 %v853_v2  ;;  %v938_v6 = vpop.permute.xlu1 %937 }
 0x197   :  { %1362 = vmatpush3.bf16.msra.mxu1 %v1805_v25  ;;  %v1570_v25 = vld [vmem:[%s2051_s1 + $0x50] ss:$36 sps:$4 sm:$0xff]  }
 0x198   :  { %1367 = vmatprep.subr.bf16.mxu1 %v471_v1 }
 0x199   :  { %1458 = vmatpush3.bf16.msra.mxu0 %v853_v2  ;;  %v479_v9 = vpop.permute.xlu0 %478 }
 0x19a   :  { %1459 = vmatprep.subr.bf16.mxu0 %v855_v48  ;;  %v940_v10 = vpop.permute.xlu1 %939  ;;  %1364 = vmatmul.mubr.bf16.vlgmr.msra.gmra.mrb[0].mxu1 %v1566_v7 }
 0x19b   :  { %1368 = vmatpush3.bf16.msra.mxu1 %v471_v1  ;;  %1383 = vmatprep.mubr.bf16.mxu1 %v1569_v8 }
 0x19c   :  { %1369 = vmatprep.subr.bf16.mxu1 %v473_v55 }
 0x19d   :  { %1460 = vmatpush3.bf16.msra.mxu0 %v855_v48  ;;  %v481_v11 = vpop.permute.xlu0 %480 }
 0x19e   :  { %1461 = vmatprep.subr.bf16.mxu0 %v857_v3  ;;  %v942_v12 = vpop.permute.xlu1 %941 }
 0x19f   :  { %1370 = vmatpush3.bf16.msra.mxu1 %v473_v55 }
 0x1a0   :  { %1371 = vmatprep.subr.bf16.mxu1 %v475_v0 }
 0x1a1   :  { %1462 = vmatpush3.bf16.msra.mxu0 %v857_v3  ;;  %v483_v14 = vpop.permute.xlu0 %482 }
 0x1a2   :  { %1467 = vmatprep.subr.bf16.mxu0 %v936_v4  ;;  %v944_v16 = vpop.permute.xlu1 %943 }
 0x1a3   :  { %1372 = vmatpush3.bf16.msra.mxu1 %v475_v0 }
 0x1a4   :  { %1373 = vmatprep.subr.bf16.mxu1 %v477_v5  ;;  %1464 = vmatmul.mubr.bf16.vlgmr.msra.gmra.mrb[0].mxu0 %v1568_v13 }
 0x1a5   :  { %1468 = vmatpush3.bf16.msra.mxu0 %v936_v4  ;;  %v485_v17 = vpop.permute.xlu0 %484  ;;  %1483 = vmatprep.mubr.bf16.mxu0 %v1571_v15 }
 0x1a6   :  { %1469 = vmatprep.subr.bf16.mxu0 %v938_v6  ;;  %v946_v18 = vpop.permute.xlu1 %945 }
 0x1a7   :  { %1374 = vmatpush3.bf16.msra.mxu1 %v477_v5 }
 0x1a8   :  { %1375 = vmatprep.subr.bf16.mxu1 %v479_v9 }
 0x1a9   :  { %1470 = vmatpush3.bf16.msra.mxu0 %v938_v6  ;;  %v564_v19 = vpop.permute.xlu0 %563 }
 0x1aa   :  { %1471 = vmatprep.subr.bf16.mxu0 %v940_v10  ;;  %v948_v20 = vpop.permute.xlu1 %947 }
 0x1ab   :  { %1376 = vmatpush3.bf16.msra.mxu1 %v479_v9 }
 0x1ac   :  { %1377 = vmatprep.subr.bf16.mxu1 %v481_v11 }
 0x1ad   :  { %1472 = vmatpush3.bf16.msra.mxu0 %v940_v10  ;;  %v566_v22 = vpop.permute.xlu0 %565 }
 0x1ae   :  { %1473 = vmatprep.subr.bf16.mxu0 %v942_v12  ;;  %v950_v21 = vpop.permute.xlu1 %949 }
 0x1af   :  { %1378 = vmatpush3.bf16.msra.mxu1 %v481_v11 }
 0x1b0   :  { %1379 = vmatprep.subr.bf16.mxu1 %v483_v14 }
 0x1b1   :  { %1474 = vmatpush3.bf16.msra.mxu0 %v942_v12  ;;  %v568_v24 = vpop.permute.xlu0 %567 }
 0x1b2   :  { %1475 = vmatprep.subr.bf16.mxu0 %v944_v16  ;;  %v1029_v23 = vpop.permute.xlu1 %1028 }
 0x1b3   :  { %1380 = vmatpush3.bf16.msra.mxu1 %v483_v14 }
 0x1b4   :  { %1381 = vmatprep.subr.bf16.mxu1 %v485_v17 }
 0x1b5   :  { %1476 = vmatpush3.bf16.msra.mxu0 %v944_v16  ;;  %v570_v28 = vpop.permute.xlu0 %569 }
 0x1b6   :  { %1477 = vmatprep.subr.bf16.mxu0 %v946_v18  ;;  %v1031_v27 = vpop.permute.xlu1 %1030 }
 0x1b7   :  { %1382 = vmatpush3.bf16.msra.mxu1 %v485_v17 }
 0x1b8   :  { %1387 = vmatprep.subr.bf16.mxu1 %v564_v19 }
 0x1b9   :  { %1478 = vmatpush3.bf16.msra.mxu0 %v946_v18  ;;  %v572_v31 = vpop.permute.xlu0 %571 }
 0x1ba   :  { %1479 = vmatprep.subr.bf16.mxu0 %v948_v20  ;;  %1384 = vmatmul.mubr.bf16.vlgmr.msra.gmra.mrb[0].mxu1 %v1570_v25  ;;  %v1033_v29 = vpop.permute.xlu1 %1032 }
 0x1bb   :  { %1388 = vmatpush3.bf16.msra.mxu1 %v564_v19  ;;  %1403 = vmatprep.mubr.bf16.mxu1 %v1573_v26 }
 0x1bc   :  { %1389 = vmatprep.subr.bf16.mxu1 %v566_v22 }
 0x1bd   :  { %1480 = vmatpush3.bf16.msra.mxu0 %v948_v20  ;;  %v574_v34 = vpop.permute.xlu0 %573 }
 0x1be   :  { %1481 = vmatprep.subr.bf16.mxu0 %v950_v21  ;;  %v1035_v33 = vpop.permute.xlu1 %1034 }
 0x1bf   :  { %1390 = vmatpush3.bf16.msra.mxu1 %v566_v22 }
 0x1c0   :  { %1391 = vmatprep.subr.bf16.mxu1 %v568_v24 }
 0x1c1   :  { %1482 = vmatpush3.bf16.msra.mxu0 %v950_v21  ;;  %v576_v36 = vpop.permute.xlu0 %575 }
 0x1c2   :  { %1487 = vmatprep.subr.bf16.mxu0 %v1029_v23  ;;  %v1037_v35 = vpop.permute.xlu1 %1036 }
 0x1c3   :  { %1392 = vmatpush3.bf16.msra.mxu1 %v568_v24 }
 0x1c4   :  { %1393 = vmatprep.subr.bf16.mxu1 %v570_v28  ;;  %1484 = vmatmul.mubr.bf16.vlgmr.msra.gmra.mrb[0].mxu0 %v1572_v30 }
 0x1c5   :  { %1488 = vmatpush3.bf16.msra.mxu0 %v1029_v23  ;;  %1503 = vmatprep.mubr.bf16.mxu0 %v1575_v32  ;;  %v578_v38 = vpop.permute.xlu0 %577 }
 0x1c6   :  { %1489 = vmatprep.subr.bf16.mxu0 %v1031_v27  ;;  %v1039_v37 = vpop.permute.xlu1 %1038 }
 0x1c7   :  { %1394 = vmatpush3.bf16.msra.mxu1 %v570_v28 }
 0x1c8   :  { %1395 = vmatprep.subr.bf16.mxu1 %v572_v31 }
 0x1c9   :  { %1490 = vmatpush3.bf16.msra.mxu0 %v1031_v27 }
 0x1ca   :  { %1491 = vmatprep.subr.bf16.mxu0 %v1033_v29  ;;  %v1041_v41 = vpop.permute.xlu1 %1040 }
 0x1cb   :  { %1396 = vmatpush3.bf16.msra.mxu1 %v572_v31 }
 0x1cc   :  { %1397 = vmatprep.subr.bf16.mxu1 %v574_v34 }
 0x1cd   :  { %1492 = vmatpush3.bf16.msra.mxu0 %v1033_v29 }
 0x1ce   :  { %1493 = vmatprep.subr.bf16.mxu0 %v1035_v33  ;;  %v1043_v42 = vpop.permute.xlu1 %1042 }
 0x1cf   :  { %1398 = vmatpush3.bf16.msra.mxu1 %v574_v34 }
 0x1d0   :  { %1399 = vmatprep.subr.bf16.mxu1 %v576_v36 }
 0x1d1   :  { %1494 = vmatpush3.bf16.msra.mxu0 %v1035_v33 }
 0x1d2   :  { %1495 = vmatprep.subr.bf16.mxu0 %v1037_v35 }
 0x1d3   :  { %1400 = vmatpush3.bf16.msra.mxu1 %v576_v36 }
 0x1d4   :  { %1401 = vmatprep.subr.bf16.mxu1 %v578_v38 }
 0x1d5   :  { %1496 = vmatpush3.bf16.msra.mxu0 %v1037_v35 }
 0x1d6   :  { %1497 = vmatprep.subr.bf16.mxu0 %v1039_v37 }
 0x1d7   :  { %1402 = vmatpush3.bf16.msra.mxu1 %v578_v38 }
 0x1d9   :  { %1498 = vmatpush3.bf16.msra.mxu0 %v1039_v37 }
 0x1da   :  { %1499 = vmatprep.subr.bf16.mxu0 %v1041_v41  ;;  %1404 = vmatmul.mubr.bf16.vlgmr.msra.gmra.mrb[0].mxu1 %v1574_v40 }
 0x1dd   :  { %1500 = vmatpush3.bf16.msra.mxu0 %v1041_v41 }
 0x1de   :  { %1501 = vmatprep.subr.bf16.mxu0 %v1043_v42 }
 0x1e1   :  { %1502 = vmatpush3.bf16.msra.mxu0 %v1043_v42 }
 0x1e4   :  { %1504 = vmatmul.mubr.bf16.vlgmr.msra.gmra.mrb[0].mxu0 %v1576_v43 }
 0x2ad   :  { %v1405_v44 = vpop.f32.mrb[0].mxu1 }
 0x2ae   :  { %v621_v45 = vpop.f32.mrb[1].mxu1 }
 0x2af   :  { %v1406_v46 = vpop.f32.mrb[2].mxu1 }
 0x2b0   :  { %v624_v47 = vpop.f32.mrb[3].mxu1 }
 0x2b7   :  { %v1505_v49 = vpop.f32.mrb[0].mxu0 }
 0x2b8   :  { %v1507_v50 = vadd.f32 %v1505_v49, %v1405_v44  ;;  %v1086_v51 = vpop.f32.mrb[1].mxu0 }
 0x2b9   :  { %v1508_v52 = vadd.f32 %v1086_v51, %v621_v45  ;;  %v1506_v53 = vpop.f32.mrb[2].mxu0 }
 0x2ba   :  { %v1509_v54 = vadd.f32 %v1506_v53, %v1406_v46  ;;  %v1089_v56 = vpop.f32.mrb[3].mxu0  ;;  %1118 = vrot.lane.b32.xlu0 %v1507_v50, %s1589_s27  ;;  %1108 = vst.msk [vmem:[%s2052_s2 + $0x10] sm:$0xff] %vm1105_vm8, %v1507_v50 }
 0x2bb   :  { %v1510_v57 = vadd.f32 %v1089_v56, %v624_v47  ;;  %1106 = vst.msk [vmem:[%s2052_s2] sm:$0xff] %vm1105_vm8, %v1508_v52 }
 0x2bc   :  { %1120 = vrot.lane.b32.xlu1 %v1509_v54, %s1589_s27  ;;  %1109 = vst.msk [vmem:[%s2052_s2 + $0x18] sm:$0xff] %vm1105_vm8, %v1509_v54 }
 0x2bd   :  { %1107 = vst.msk [vmem:[%s2052_s2 + $0x8] sm:$0xff] %vm1105_vm8, %v1510_v57 }
 0x2be   :  { %1135 = vrot.lane.b32.xlu0 %v1507_v50, %s1593_s17 }
 0x2c0   :  { %1137 = vrot.lane.b32.xlu1 %v1509_v54, %s1593_s17 }
 0x2c2   :  { %1152 = vrot.lane.b32.xlu0 %v1507_v50, %s1594_s18 }
 0x2c4   :  { %1154 = vrot.lane.b32.xlu1 %v1509_v54, %s1594_s18 }
 0x2c6   :  { %1169 = vrot.lane.b32.xlu0 %v1507_v50, %s1595_s23 }
 0x2c8   :  { %1171 = vrot.lane.b32.xlu1 %v1509_v54, %s1595_s23 }
 0x2ca   :  { %1185 = vrot.lane.b32.xlu0 %v1507_v50, %s1585_s0 }
 0x2cc   :  { %1187 = vrot.lane.b32.xlu1 %v1509_v54, %s1585_s0 }
 0x2ce   :  { %1114 = vrot.lane.b32.xlu0 %v1508_v52, %s1589_s27 }
 0x2d0   :  { %1116 = vrot.lane.b32.xlu1 %v1510_v57, %s1589_s27 }
 0x2d2   :  { %1131 = vrot.lane.b32.xlu0 %v1508_v52, %s1593_s17 }
 0x2d4   :  { %1133 = vrot.lane.b32.xlu1 %v1510_v57, %s1593_s17 }
 0x2d6   :  { %1148 = vrot.lane.b32.xlu0 %v1508_v52, %s1594_s18 }
 0x2d8   :  { %1150 = vrot.lane.b32.xlu1 %v1510_v57, %s1594_s18 }
 0x2da   :  { %1165 = vrot.lane.b32.xlu0 %v1508_v52, %s1595_s23 }
 0x2dc   :  { %1167 = vrot.lane.b32.xlu1 %v1510_v57, %s1595_s23 }
 0x2de   :  { %1181 = vrot.lane.b32.xlu0 %v1508_v52, %s1585_s0 }
 0x2e0   :  { %1183 = vrot.lane.b32.xlu1 %v1510_v57, %s1585_s0 }
 0x2e2   :  { %1198 = vrot.lane.b32.xlu0 %v1508_v52, %s1596_s24 }
 0x2e4   :  { %1200 = vrot.lane.b32.xlu1 %v1510_v57, %s1596_s24 }
 0x2e6   :  { %1202 = vrot.lane.b32.xlu0 %v1507_v50, %s1596_s24 }
 0x2e8   :  { %1204 = vrot.lane.b32.xlu1 %v1509_v54, %s1596_s24 }
 0x32c   :  { %v1119_v58 = vpop.permute.xlu0 %1118 }
 0x32d   :  { %1129 = vst.msk [vmem:[%s2052_s2 + $0x10] sm:$0xff] %vm1126_vm9, %v1119_v58 }
 0x32e   :  { %v1121_v59 = vpop.permute.xlu1 %1120 }
 0x32f   :  { %1130 = vst.msk [vmem:[%s2052_s2 + $0x18] sm:$0xff] %vm1126_vm9, %v1121_v59 }
 0x330   :  { %v1136_v60 = vpop.permute.xlu0 %1135 }
 0x331   :  { %1146 = vst.msk [vmem:[%s2052_s2 + $0x10] sm:$0xff] %vm1143_vm10, %v1136_v60 }
 0x332   :  { %v1138_v61 = vpop.permute.xlu1 %1137 }
 0x333   :  { %1147 = vst.msk [vmem:[%s2052_s2 + $0x18] sm:$0xff] %vm1143_vm10, %v1138_v61 }
 0x334   :  { %v1153_v39 = vpop.permute.xlu0 %1152 }
 0x335   :  { %1163 = vst.msk [vmem:[%s2052_s2 + $0x10] sm:$0xff] %vm1160_vm11, %v1153_v39 }
 0x336   :  { %v1155_v62 = vpop.permute.xlu1 %1154 }
 0x337   :  { %1164 = vst.msk [vmem:[%s2052_s2 + $0x18] sm:$0xff] %vm1160_vm11, %v1155_v62 }
 0x338   :  { %v1170_v48 = vpop.permute.xlu0 %1169 }
 0x339   :  { %1179 = vst.msk [vmem:[%s2052_s2 + $0x10] sm:$0xff] %vm143_vm3, %v1170_v48 }
 0x33a   :  { %v1172_v63 = vpop.permute.xlu1 %1171 }
 0x33b   :  { %1180 = vst.msk [vmem:[%s2052_s2 + $0x18] sm:$0xff] %vm143_vm3, %v1172_v63 }
 0x33c   :  { %v1186_v1 = vpop.permute.xlu0 %1185 }
 0x33d   :  { %1196 = vst.msk [vmem:[%s2052_s2 + $0x10] sm:$0xff] %vm1193_vm12, %v1186_v1 }
 0x33e   :  { %v1188_v2 = vpop.permute.xlu1 %1187 }
 0x33f   :  { %1197 = vst.msk [vmem:[%s2052_s2 + $0x18] sm:$0xff] %vm1193_vm12, %v1188_v2 }
 0x340   :  { %v1115_v55 = vpop.permute.xlu0 %1114 }
 0x341   :  { %1127 = vst.msk [vmem:[%s2052_s2] sm:$0xff] %vm1126_vm9, %v1115_v55 }
 0x342   :  { %v1117_v3 = vpop.permute.xlu1 %1116 }
 0x343   :  { %1128 = vst.msk [vmem:[%s2052_s2 + $0x8] sm:$0xff] %vm1126_vm9, %v1117_v3 }
 0x344   :  { %v1132_v0 = vpop.permute.xlu0 %1131 }
 0x345   :  { %1144 = vst.msk [vmem:[%s2052_s2] sm:$0xff] %vm1143_vm10, %v1132_v0 }
 0x346   :  { %v1134_v4 = vpop.permute.xlu1 %1133 }
 0x347   :  { %1145 = vst.msk [vmem:[%s2052_s2 + $0x8] sm:$0xff] %vm1143_vm10, %v1134_v4 }
 0x348   :  { %v1149_v5 = vpop.permute.xlu0 %1148 }
 0x349   :  { %1161 = vst.msk [vmem:[%s2052_s2] sm:$0xff] %vm1160_vm11, %v1149_v5 }
 0x34a   :  { %v1151_v6 = vpop.permute.xlu1 %1150 }
 0x34b   :  { %1162 = vst.msk [vmem:[%s2052_s2 + $0x8] sm:$0xff] %vm1160_vm11, %v1151_v6 }
 0x34c   :  { %v1166_v7 = vpop.permute.xlu0 %1165 }
 0x34d   :  { %1177 = vst.msk [vmem:[%s2052_s2] sm:$0xff] %vm143_vm3, %v1166_v7 }
 0x34e   :  { %v1168_v8 = vpop.permute.xlu1 %1167 }
 0x34f   :  { %1178 = vst.msk [vmem:[%s2052_s2 + $0x8] sm:$0xff] %vm143_vm3, %v1168_v8 }
 0x350   :  { %v1182_v9 = vpop.permute.xlu0 %1181 }
 0x351   :  { %1194 = vst.msk [vmem:[%s2052_s2] sm:$0xff] %vm1193_vm12, %v1182_v9 }
 0x352   :  { %v1184_v10 = vpop.permute.xlu1 %1183 }
 0x353   :  { %1195 = vst.msk [vmem:[%s2052_s2 + $0x8] sm:$0xff] %vm1193_vm12, %v1184_v10 }
 0x354   :  { %v1199_v11 = vpop.permute.xlu0 %1198 }
 0x355   :  { %1211 = vst.msk [vmem:[%s2052_s2] sm:$0xff] %vm1210_vm13, %v1199_v11 }
 0x356   :  { %v1201_v12 = vpop.permute.xlu1 %1200 }
 0x357   :  { %1212 = vst.msk [vmem:[%s2052_s2 + $0x8] sm:$0xff] %vm1210_vm13, %v1201_v12 }
 0x358   :  { %v1203_v13 = vpop.permute.xlu0 %1202 }
 0x359   :  { %1213 = vst.msk [vmem:[%s2052_s2 + $0x10] sm:$0xff] %vm1210_vm13, %v1203_v13 }
 0x35a   :  { %v1205_v14 = vpop.permute.xlu1 %1204 }
 0x35b   :  { %1214 = vst.msk [vmem:[%s2052_s2 + $0x18] sm:$0xff] %vm1210_vm13, %v1205_v14 }

</bundles_post_ra>
